<compile_context>
chip_gen: v7x
topology: tpu7x:2x2x1
jax: 0.10.0
libtpu: 0.0.40
codegen_flags: <defaults>
</compile_context>

<pallas_src>
import jax
import jax.numpy as jnp
from jax import lax
from jax.experimental import pallas as pl
from jax.experimental.pallas import tpu as pltpu


# --------------------------------------------------------------------------
# Per-generation VMEM budget + tile-size heuristics
# --------------------------------------------------------------------------
def _vmem_capacity_bytes():
    try:
        info = pltpu.get_tpu_info()
        for name in ("vmem_capacity_bytes", "vmem_size_bytes", "vmem_bytes"):
            cap = getattr(info, name, None)
            if cap:
                return int(cap)
    except Exception:
        pass
    return 64 * 1024 * 1024          # conservative fallback: v7x physical VMEM


def _choose_tiles(B, S, H, itemsize, opad, emit_pooled,
                  target_tile_bytes, vmem_budget):
    """Pick (BB, TS): each grid step streams a ~target_tile_bytes token slab
    while double-buffered inputs + outputs + scratch fit inside vmem_budget."""
    s8 = 8 * pl.cdiv(S, 8)
    row_bytes = H * itemsize

    def vmem_use(bb, ts):
        use = 2 * bb * ts * H * itemsize            # token tile (double buffer)
        use += 2 * bb * 4                           # per-row lengths
        use += 2 * (H * opad * 4 + opad * 4)        # fused head weights + bias
        use += 2 * bb * opad * 4                    # scores output
        use += (2 * bb * H * 4) if emit_pooled else 0
        use += bb * H * 4                           # f32 accumulator scratch
        return use

    # 1) grow the seq tile first (multiple of 8, capped at padded seq length)
    ts = max(8, 8 * (target_tile_bytes // max(1, 8 * row_bytes)))
    ts = min(ts, s8)

    # 2) add a batch sub-block only once a full row fits in a single tile; keep
    #    >=2 batch grid steps when possible so v7x megacore has parallel work.
    bb = 1
    if ts >= s8 and B > 1:
        max_bb = max(1, target_tile_bytes // max(1, s8 * row_bytes))
        for cand in range(min(B, max_bb), 0, -1):
            if B % cand == 0 and (B // cand >= 2 or cand == 1):
                bb = cand
                break

    # 3) shrink until comfortably inside the scoped-VMEM budget
    while vmem_use(bb, ts) > int(0.6 * vmem_budget) and (ts > 8 or bb > 1):
        if bb > 1:
            bb = max(d for d in range(1, bb) if B % d == 0)
        else:
            ts = max(8, (ts // 2) // 8 * 8)
    return bb, ts


# --------------------------------------------------------------------------
# Pallas kernels
# --------------------------------------------------------------------------
def _make_pooled_kernel(pool_strategy, emit_pooled):
    """mean / max pooling + fused heads.  grid = (B/BB, S/TS)."""

    def kernel(ntiles_ref, tok_ref, lens_ref, w_ref, b_ref, *refs):
        if emit_pooled:
            scores_ref, pooled_ref, acc_ref = refs
        else:
            scores_ref, acc_ref = refs
            pooled_ref = None

        b = pl.program_id(0)
        s = pl.program_id(1)
        n_s = pl.num_programs(1)
        BB, TS, H = tok_ref.shape

        # ---- init resident accumulator on the first seq tile --------------
        @pl.when(s == 0)
        def _init():
            fill = -1e9 if pool_strategy == "max" else 0.0
            acc_ref[...] = jnp.full(acc_ref.shape, fill, dtype=acc_ref.dtype)

        # ---- accumulate; skipped entirely for fully-padded seq tiles ------
        @pl.when(s < ntiles_ref[b])
        def _accumulate():
            tok = tok_ref[...].astype(jnp.float32)                    # [BB,TS,H]
            pos = lax.broadcasted_iota(jnp.int32, (BB, TS, H), 1) + s * TS
            valid = pos < lens_ref[...]                               # [BB,TS,H]
            if pool_strategy == "mean":
                acc_ref[...] += jnp.sum(tok * valid.astype(jnp.float32), axis=1)
            else:  # max — torch fills masked positions with -1e9
                masked = jnp.where(valid, tok, -1e9)
                acc_ref[...] = jnp.maximum(acc_ref[...], jnp.max(masked, axis=1))

        # ---- finalize: pool + fused triple/relation heads ------------------
        @pl.when(s == n_s - 1)
        def _finalize():
            if pool_strategy == "mean":
                count = jnp.maximum(
                    lens_ref[...].reshape(BB, 1).astype(jnp.float32), 1e-9)
                pooled = acc_ref[...] / count                          # [BB,H]
            else:
                pooled = acc_ref[...]
            if emit_pooled:
                pooled_ref[:, 0, :] = pooled.astype(pooled_ref.dtype)
            scores = jnp.dot(pooled, w_ref[...],
                             preferred_element_type=jnp.float32) + b_ref[...]
            scores_ref[:, 0, :] = scores.astype(scores_ref.dtype)

    return kernel


def _make_cls_kernel(emit_pooled):
    """cls pooling fast path: only the first sublane block per row is read."""

    def kernel(tok_ref, w_ref, b_ref, *refs):
        if emit_pooled:
            scores_ref, pooled_ref = refs
        else:
            (scores_ref,) = refs
            pooled_ref = None
        pooled = tok_ref[:, 0, :].astype(jnp.float32)                  # [BB,H]
        if emit_pooled:
            pooled_ref[:, 0, :] = pooled.astype(pooled_ref.dtype)
        scores = jnp.dot(pooled, w_ref[...],
                         preferred_element_type=jnp.float32) + b_ref[...]
        scores_ref[:, 0, :] = scores.astype(scores_ref.dtype)

    return kernel


# --------------------------------------------------------------------------
# Wrapper: everything after the transformer encoder (TextScorer.forward tail)
# --------------------------------------------------------------------------
def text_scorer_forward(token_embeddings, attention_mask,
                        w_triple, b_triple, w_rel, b_rel, *,
                        pool_strategy="mean", output_embeddings=False,
                        target_tile_bytes=2 * 1024 * 1024):
    if pool_strategy not in ("mean", "max", "cls"):
        # TODO(synk): pool_strategy=None (per-token [B,S,*] head outputs) is
        # not implemented in this fused pooled-scoring kernel.
        raise ValueError(f"pool_strategy={pool_strategy} not supported")

    B, S, H = token_embeddings.shape
    R = w_rel.shape[1]
    O = 1 + R
    OPAD = 128 * pl.cdiv(O, 128)                 # lane-dense head output
    itemsize = jnp.dtype(token_embeddings.dtype).itemsize
    emit_pooled = bool(output_embeddings)

    # Fused head weights kept f32 (tiny) so head math stays exact for bf16 streams.
    w_heads = jnp.zeros((H, OPAD), jnp.float32)
    w_heads = w_heads.at[:, 0:1].set(w_triple.astype(jnp.float32))
    w_heads = w_heads.at[:, 1:O].set(w_rel.astype(jnp.float32))
    b_heads = jnp.zeros((1, OPAD), jnp.float32)
    b_heads = b_heads.at[:, 0:1].set(jnp.reshape(b_triple, (1, 1)).astype(jnp.float32))
    b_heads = b_heads.at[:, 1:O].set(jnp.reshape(b_rel, (1, R)).astype(jnp.float32))

    vmem_cap = _vmem_capacity_bytes()
    vmem_budget = min(int(0.75 * vmem_cap), 100 * 1024 * 1024)

    out_shapes = [jax.ShapeDtypeStruct((B, 1, OPAD), jnp.float32)]
    if emit_pooled:
        out_shapes.append(jax.ShapeDtypeStruct((B, 1, H), jnp.float32))

    if pool_strategy == "cls":
        BB, _ = _choose_tiles(B, S, H, itemsize, OPAD, emit_pooled,
                              target_tile_bytes, vmem_budget)
        TSC = 8 if S >= 8 else S                 # first sublane block only
        grid = (B // BB,)
        in_specs = [
            pl.BlockSpec((BB, TSC, H), lambda b: (b, 0, 0)),
            pl.BlockSpec((H, OPAD), lambda b: (0, 0)),
            pl.BlockSpec((1, OPAD), lambda b: (0, 0)),
        ]
        out_specs = [pl.BlockSpec((BB, 1, OPAD), lambda b: (b, 0, 0))]
        if emit_pooled:
            out_specs.append(pl.BlockSpec((BB, 1, H), lambda b: (b, 0, 0)))
        grid_spec = pltpu.PrefetchScalarGridSpec(
            num_scalar_prefetch=0, grid=grid,
            in_specs=in_specs, out_specs=tuple(out_specs))
        kernel = _make_cls_kernel(emit_pooled)
        args = (token_embeddings, w_heads, b_heads)
        dim_sem = ("parallel",)
        flops = 2.0 * B * H * OPAD
        bytes_acc = (B * TSC * H * itemsize + w_heads.size * 4 + OPAD * 4
                     + B * OPAD * 4 + (B * H * 4 if emit_pooled else 0))
    else:
        BB, TS = _choose_tiles(B, S, H, itemsize, OPAD, emit_pooled,
                               target_tile_bytes, vmem_budget)
        S_pad = TS * pl.cdiv(S, TS)
        tok = token_embeddings
        if S_pad != S:
            # TODO(synk): this pad re-copies the token tensor once in HBM;
            # callers with tile-aligned seq lengths avoid it.
            tok = jnp.pad(token_embeddings, ((0, 0), (0, S_pad - S), (0, 0)))

        # Per-row valid lengths (standard prefix attention masks).
        # TODO(synk): arbitrary non-prefix masks would need a streamed-mask path.
        lens = jnp.sum(attention_mask.astype(jnp.int32), axis=1)            # [B]
        ntiles = (jnp.max(lens.reshape(B // BB, BB), axis=1) + TS - 1) // TS
        lens_v = lens.reshape(B, 1, 1).astype(jnp.int32)

        def tok_map(b, s, nt):
            # clamp to the last valid tile: unchanged block index => no new DMA
            return (b, jnp.minimum(s, jnp.maximum(nt[b] - 1, 0)), 0)

        grid = (B // BB, S_pad // TS)
        in_specs = [
            pl.BlockSpec((BB, TS, H), tok_map),                    # token tile
            pl.BlockSpec((BB, 1, 1), lambda b, s, nt: (b, 0, 0)),  # lengths
            pl.BlockSpec((H, OPAD), lambda b, s, nt: (0, 0)),      # fused weights
            pl.BlockSpec((1, OPAD), lambda b, s, nt: (0, 0)),      # fused bias
        ]
        out_specs = [pl.BlockSpec((BB, 1, OPAD), lambda b, s, nt: (b, 0, 0))]
        if emit_pooled:
            out_specs.append(pl.BlockSpec((BB, 1, H), lambda b, s, nt: (b, 0, 0)))
        grid_spec = pltpu.PrefetchScalarGridSpec(
            num_scalar_prefetch=1, grid=grid,
            in_specs=in_specs, out_specs=tuple(out_specs),
            scratch_shapes=[pltpu.VMEM((BB, H), jnp.float32)])     # pooled acc
        kernel = _make_pooled_kernel(pool_strategy, emit_pooled)
        args = (ntiles.astype(jnp.int32), tok, lens_v, w_heads, b_heads)
        dim_sem = ("parallel", "arbitrary")
        flops = 3.0 * B * S * H + 2.0 * B * H * OPAD
        bytes_acc = (tok.size * itemsize + B * 4 + w_heads.size * 4 + OPAD * 4
                     + B * OPAD * 4 + (B * H * 4 if emit_pooled else 0))

    res = pl.pallas_call(
        kernel,
        out_shape=tuple(out_shapes),
        grid_spec=grid_spec,
        compiler_params=pltpu.CompilerParams(
            dimension_semantics=dim_sem,
            vmem_limit_bytes=int(vmem_budget)),
        cost_estimate=pl.CostEstimate(
            flops=int(flops), transcendentals=0, bytes_accessed=int(bytes_acc)),
    )(*args)

    scores = res[0]
    outputs = {
        "triple_scores": scores[:, 0, 0:1],        # [B, 1]
        "relation_scores": scores[:, 0, 1:O],      # [B, R]
    }
    if emit_pooled:
        outputs["embeddings"] = res[1][:, 0, :]    # [B, H]
    return outputs


# --------------------------------------------------------------------------
# Plain-JAX glue: deterministic synthetic "encoder" standing in for AutoModel
# --------------------------------------------------------------------------
def synthetic_encoder(input_ids, token_type_ids, word_emb, type_emb, pos_emb):
    # TODO(synk): real AutoModel self-attention/FFN layers not translated.
    S = input_ids.shape[1]
    return word_emb[input_ids] + type_emb[token_type_ids] + pos_emb[None, :S, :]


# Pure-JAX reference of the Pallas portion (for correctness asserts).
def _reference(tok, attention_mask, w_triple, b_triple, w_rel, b_rel, pool_strategy):
    tok = tok.astype(jnp.float32)
    maskf = attention_mask.astype(jnp.float32)[..., None]
    if pool_strategy == "mean":
        pooled = jnp.sum(tok * maskf, axis=1) / jnp.maximum(jnp.sum(maskf, axis=1), 1e-9)
    elif pool_strategy == "max":
        pooled = jnp.max(jnp.where(maskf > 0, tok, -1e9), axis=1)
    else:  # cls
        pooled = tok[:, 0]
    triple = pooled @ w_triple + b_triple.reshape(1, 1)
    rel = pooled @ w_rel + b_rel.reshape(1, -1)
    return triple, rel, pooled


if __name__ == "__main__":
    B, S, H = 2, 16, 32        # batch, seq, hidden_size
    NREL = 8                   # num_relations
    VOCAB, NTYPES = 64, 2

    key = jax.random.PRNGKey(0)
    ks = jax.random.split(key, 8)

    # deterministic synthetic parameters
    word_emb = jax.random.normal(ks[0], (VOCAB, H), jnp.float32) * 0.02
    type_emb = jax.random.normal(ks[1], (NTYPES, H), jnp.float32) * 0.02
    pos_emb = jax.random.normal(ks[2], (S, H), jnp.float32) * 0.02
    w_triple = jax.random.normal(ks[3], (H, 1), jnp.float32) * 0.1       # triple_score_head
    b_triple = jax.random.normal(ks[4], (1,), jnp.float32) * 0.01
    w_rel = jax.random.normal(ks[5], (H, NREL), jnp.float32) * 0.1       # relation_cls_head
    b_rel = jax.random.normal(ks[6], (NREL,), jnp.float32) * 0.01

    # deterministic synthetic tokenized inputs
    input_ids = jax.random.randint(ks[7], (B, S), 0, VOCAB)
    token_type_ids = jnp.zeros((B, S), jnp.int32)
    attention_mask = jnp.array([[1] * S,
                                [1] * (S - 4) + [0] * 4], jnp.int32)

    # synthetic encoder output (stands in for AutoModel hidden states)
    tok = synthetic_encoder(input_ids, token_type_ids, word_emb, type_emb, pos_emb)

    # f32 path, with pooled-embedding output
    for strat in ("mean", "max", "cls"):
        out = text_scorer_forward(tok, attention_mask, w_triple, b_triple,
                                  w_rel, b_rel, pool_strategy=strat,
                                  output_embeddings=True)
        jax.block_until_ready(out)
        r_triple, r_rel, r_pool = _reference(tok, attention_mask, w_triple,
                                             b_triple, w_rel, b_rel, strat)
        assert jnp.allclose(out["triple_scores"], r_triple, atol=1e-5), f"{strat}: triple"
        assert jnp.allclose(out["relation_scores"], r_rel, atol=1e-5), f"{strat}: relation"
        assert jnp.allclose(out["embeddings"], r_pool, atol=1e-5), f"{strat}: embeddings"

    # bf16 token stream (memory-bound win), no pooled-output pipeline
    tok_bf16 = tok.astype(jnp.bfloat16)
    for strat in ("mean", "max", "cls"):
        out = text_scorer_forward(tok_bf16, attention_mask, w_triple, b_triple,
                                  w_rel, b_rel, pool_strategy=strat,
                                  output_embeddings=False)
        jax.block_until_ready(out)
        r_triple, r_rel, _ = _reference(tok_bf16, attention_mask, w_triple,
                                        b_triple, w_rel, b_rel, strat)
        assert jnp.allclose(out["triple_scores"], r_triple, atol=1e-4), f"{strat}: triple bf16"
        assert jnp.allclose(out["relation_scores"], r_rel, atol=1e-4), f"{strat}: relation bf16"

    print("KERNEL_OK")
</pallas_src>

<mosaic_0001>
module attributes {stable_mosaic.version = 11 : i64} {
  func.func @kernel(%arg0: i32, %arg1: i32, %arg2: memref<2xi32, #tpu.memory_space<smem>>, %arg3: memref<1x16x32xf32, #tpu.memory_space<vmem>>, %arg4: memref<1x1x1xi32, #tpu.memory_space<vmem>>, %arg5: memref<32x128xf32, #tpu.memory_space<vmem>>, %arg6: memref<1x128xf32, #tpu.memory_space<vmem>>, %arg7: memref<1x1x128xf32, #tpu.memory_space<vmem>>, %arg8: memref<1x1x32xf32, #tpu.memory_space<vmem>>, %arg9: memref<1x32xf32, #tpu.memory_space<vmem>>) attributes {dimension_semantics = [#tpu.dimension_semantics<parallel>, #tpu.dimension_semantics<arbitrary>], iteration_bounds = array<i64: 2, 1>, scalar_prefetch = 1 : i64, scratch_operands = 1 : i64, tpu.core_type = #tpu.core_type<tc>, window_params = [{transform_indices = @transform_0, window_bounds = array<i64: 1, 16, 32>}, {transform_indices = @transform_1, window_bounds = array<i64: 1, 1, 1>}, {pipeline_mode = #tpu.pipeline_mode<synchronous>, transform_indices = @transform_2, window_bounds = array<i64: 32, 128>}, {pipeline_mode = #tpu.pipeline_mode<synchronous>, transform_indices = @transform_3, window_bounds = array<i64: 1, 128>}, {transform_indices = @transform_4, window_bounds = array<i64: 1, 1, 128>}, {transform_indices = @transform_5, window_bounds = array<i64: 1, 1, 32>}]} {
    %c0_i32 = arith.constant 0 : i32
    %0 = arith.cmpi eq, %arg1, %c0_i32 : i32
    %1 = arith.extui %0 : i1 to i32
    %c0_i32_0 = arith.constant 0 : i32
    %2 = arith.cmpi ne, %1, %c0_i32_0 : i32
    scf.if %2 {
      %cst = arith.constant 0.000000e+00 : f32
      %11 = vector.broadcast %cst : f32 to vector<1x32xf32>
      %c0 = arith.constant 0 : index
      %c0_4 = arith.constant 0 : index
      %12 = vector.load %arg9[%c0, %c0_4] : memref<1x32xf32, #tpu.memory_space<vmem>>, vector<1x32xf32>
      tpu.vector_store %arg9[%c0, %c0_4], %11 {strides = array<i32>} : memref<1x32xf32, #tpu.memory_space<vmem>>, vector<1x32xf32>,
    } else {
    }
    %3 = arith.index_cast %arg0 : i32 to index
    %4 = memref.load %arg2[%3] : memref<2xi32, #tpu.memory_space<smem>>
    %5 = arith.cmpi slt, %arg1, %4 : i32
    %6 = arith.extui %5 : i1 to i32
    %c0_i32_1 = arith.constant 0 : i32
    %7 = arith.cmpi ne, %6, %c0_i32_1 : i32
    scf.if %7 {
      %c0 = arith.constant 0 : index
      %c0_4 = arith.constant 0 : index
      %c0_5 = arith.constant 0 : index
      %11 = vector.load %arg3[%c0, %c0_4, %c0_5] : memref<1x16x32xf32, #tpu.memory_space<vmem>>, vector<1x16x32xf32>
      %12 = tpu.iota {dimensions = array<i32: 1>} : vector<1x16x32xi32>
      %c16_i32 = arith.constant 16 : i32
      %13 = arith.muli %arg1, %c16_i32 : i32
      %14 = vector.broadcast %13 : i32 to vector<1x16x32xi32>
      %15 = arith.addi %12, %14 : vector<1x16x32xi32>
      %c0_6 = arith.constant 0 : index
      %c0_7 = arith.constant 0 : index
      %c0_8 = arith.constant 0 : index
      %16 = vector.load %arg4[%c0_6, %c0_7, %c0_8] : memref<1x1x1xi32, #tpu.memory_space<vmem>>, vector<1x1x1xi32>
      %17 = vector.broadcast %16 : vector<1x1x1xi32> to vector<1x16x32xi32>
      %18 = arith.cmpi slt, %15, %17 : vector<1x16x32xi32>
      %c0_9 = arith.constant 0 : index
      %c0_10 = arith.constant 0 : index
      %19 = vector.load %arg9[%c0_9, %c0_10] : memref<1x32xf32, #tpu.memory_space<vmem>>, vector<1x32xf32>
      %20 = arith.extui %18 : vector<1x16x32xi1> to vector<1x16x32xi32>
      %21 = arith.sitofp %20 : vector<1x16x32xi32> to vector<1x16x32xf32>
      %22 = arith.mulf %11, %21 : vector<1x16x32xf32>
      %cst = arith.constant dense<0.000000e+00> : vector<1x32xf32>
      %23 = vector.multi_reduction <add>, %22, %cst [1] : vector<1x16x32xf32> to vector<1x32xf32>
      %24 = arith.addf %19, %23 : vector<1x32xf32>
      %c0_11 = arith.constant 0 : index
      %c0_12 = arith.constant 0 : index
      %25 = vector.load %arg9[%c0_11, %c0_12] : memref<1x32xf32, #tpu.memory_space<vmem>>, vector<1x32xf32>
      tpu.vector_store %arg9[%c0_11, %c0_12], %24 {strides = array<i32>} : memref<1x32xf32, #tpu.memory_space<vmem>>, vector<1x32xf32>,
    } else {
    }
    %c0_i32_2 = arith.constant 0 : i32
    %8 = arith.cmpi eq, %arg1, %c0_i32_2 : i32
    %9 = arith.extui %8 : i1 to i32
    %c0_i32_3 = arith.constant 0 : i32
    %10 = arith.cmpi ne, %9, %c0_i32_3 : i32
    scf.if %10 {
      %c0 = arith.constant 0 : index
      %c0_4 = arith.constant 0 : index
      %c0_5 = arith.constant 0 : index
      %11 = vector.load %arg4[%c0, %c0_4, %c0_5] : memref<1x1x1xi32, #tpu.memory_space<vmem>>, vector<1x1x1xi32>
      %12 = vector.shape_cast %11 : vector<1x1x1xi32> to vector<1x1xi32>
      %13 = arith.sitofp %12 : vector<1x1xi32> to vector<1x1xf32>
      %cst = arith.constant 9.99999971E-10 : f32
      %14 = vector.broadcast %cst : f32 to vector<1x1xf32>
      %15 = arith.maximumf %13, %14 : vector<1x1xf32>
      %c0_6 = arith.constant 0 : index
      %c0_7 = arith.constant 0 : index
      %16 = vector.load %arg9[%c0_6, %c0_7] : memref<1x32xf32, #tpu.memory_space<vmem>>, vector<1x32xf32>
      %17 = vector.broadcast %15 : vector<1x1xf32> to vector<1x32xf32>
      %18 = arith.divf %16, %17 : vector<1x32xf32>
      %c0_8 = arith.constant 0 : index
      %c0_9 = arith.constant 0 : index
      %c0_10 = arith.constant 0 : index
      %19 = vector.load %arg8[%c0_8, %c0_9, %c0_10] : memref<1x1x32xf32, #tpu.memory_space<vmem>>, vector<1x1x32xf32>
      %20 = vector.shape_cast %19 : vector<1x1x32xf32> to vector<1x32xf32>
      %21 = vector.shape_cast %18 : vector<1x32xf32> to vector<1x1x32xf32>
      tpu.vector_store %arg8[%c0_8, %c0_9, %c0_10], %21 {strides = array<i32>} : memref<1x1x32xf32, #tpu.memory_space<vmem>>, vector<1x1x32xf32>,
      %c0_11 = arith.constant 0 : index
      %c0_12 = arith.constant 0 : index
      %22 = vector.load %arg5[%c0_11, %c0_12] : memref<32x128xf32, #tpu.memory_space<vmem>>, vector<32x128xf32>
      %cst_13 = arith.constant dense<0.000000e+00> : vector<1x128xf32>
      %23 = tpu.matmul %18, %22, %cst_13 {dimension_numbers = #tpu.dot_dimension_numbers<[1], [0], [0], [1], [0, 0, 1, 1], [], []>} : vector<1x32xf32>, vector<32x128xf32>, vector<1x128xf32> -> vector<1x128xf32>
      %c0_14 = arith.constant 0 : index
      %c0_15 = arith.constant 0 : index
      %24 = vector.load %arg6[%c0_14, %c0_15] : memref<1x128xf32, #tpu.memory_space<vmem>>, vector<1x128xf32>
      %25 = arith.addf %23, %24 : vector<1x128xf32>
      %c0_16 = arith.constant 0 : index
      %c0_17 = arith.constant 0 : index
      %c0_18 = arith.constant 0 : index
      %26 = vector.load %arg7[%c0_16, %c0_17, %c0_18] : memref<1x1x128xf32, #tpu.memory_space<vmem>>, vector<1x1x128xf32>
      %27 = vector.shape_cast %26 : vector<1x1x128xf32> to vector<1x128xf32>
      %28 = vector.shape_cast %25 : vector<1x128xf32> to vector<1x1x128xf32>
      tpu.vector_store %arg7[%c0_16, %c0_17, %c0_18], %28 {strides = array<i32>} : memref<1x1x128xf32, #tpu.memory_space<vmem>>, vector<1x1x128xf32>,
    } else {
    }
    return
  }
  func.func @transform_0(%arg0: i32, %arg1: i32, %arg2: memref<2xi32, #tpu.memory_space<smem>>) -> (i32, i32, i32) {
    %0 = arith.index_cast %arg0 : i32 to index
    %1 = memref.load %arg2[%0] : memref<2xi32, #tpu.memory_space<smem>>
    %c1_i32 = arith.constant 1 : i32
    %2 = arith.subi %1, %c1_i32 : i32
    %c0_i32 = arith.constant 0 : i32
    %3 = arith.maxsi %2, %c0_i32 : i32
    %4 = arith.minsi %arg1, %3 : i32
    %c0_i32_0 = arith.constant 0 : i32
    %c0_i32_1 = arith.constant 0 : i32
    return %arg0, %4, %c0_i32_0 : i32, i32, i32
  }
  func.func @transform_1(%arg0: i32, %arg1: i32, %arg2: memref<2xi32, #tpu.memory_space<smem>>) -> (i32, i32, i32) {
    %c0_i32 = arith.constant 0 : i32
    %c0_i32_0 = arith.constant 0 : i32
    %c0_i32_1 = arith.constant 0 : i32
    return %arg0, %c0_i32, %c0_i32_0 : i32, i32, i32
  }
  func.func @transform_2(%arg0: i32, %arg1: i32, %arg2: memref<2xi32, #tpu.memory_space<smem>>) -> (i32, i32) {
    %c0_i32 = arith.constant 0 : i32
    %c0_i32_0 = arith.constant 0 : i32
    %c0_i32_1 = arith.constant 0 : i32
    return %c0_i32, %c0_i32_0 : i32, i32
  }
  func.func @transform_3(%arg0: i32, %arg1: i32, %arg2: memref<2xi32, #tpu.memory_space<smem>>) -> (i32, i32) {
    %c0_i32 = arith.constant 0 : i32
    %c0_i32_0 = arith.constant 0 : i32
    %c0_i32_1 = arith.constant 0 : i32
    return %c0_i32, %c0_i32_0 : i32, i32
  }
  func.func @transform_4(%arg0: i32, %arg1: i32, %arg2: memref<2xi32, #tpu.memory_space<smem>>) -> (i32, i32, i32) {
    %c0_i32 = arith.constant 0 : i32
    %c0_i32_0 = arith.constant 0 : i32
    %c0_i32_1 = arith.constant 0 : i32
    return %arg0, %c0_i32, %c0_i32_0 : i32, i32, i32
  }
  func.func @transform_5(%arg0: i32, %arg1: i32, %arg2: memref<2xi32, #tpu.memory_space<smem>>) -> (i32, i32, i32) {
    %c0_i32 = arith.constant 0 : i32
    %c0_i32_0 = arith.constant 0 : i32
    %c0_i32_1 = arith.constant 0 : i32
    return %arg0, %c0_i32, %c0_i32_0 : i32, i32, i32
  }
}

</mosaic_0001>

<bundles_post_ra>
// kernel: tpu_custom_call.1
= control target key start
LH: loop header
LB: loop body
LE: loop exit
PB: predicated region body
PF: predicated region fallthrough
CT: control target
= control target key end

     0   :  { %s1389_s0 = inlined_call_operand.vmem [shape: s32[2], index: 0, kind: input, shape index: {}]   ;;  %s1390_s1 = inlined_call_operand.hbm [shape: f32[2,16,32], index: 1, kind: input, shape index: {}]   ;;  %s1391_s2 = inlined_call_operand.vmem [shape: s32[2,1,1], index: 2, kind: input, shape index: {}]   ;;  %s1392_s3 = inlined_call_operand.hbm [shape: f32[32,128], index: 3, kind: input, shape index: {}]   ;;  %s1393_s4 = inlined_call_operand.vmem [shape: f32[1,128], index: 4, kind: input, shape index: {}]   ;;  %s1394_s5 = inlined_call_operand.hbm [shape: f32[2,1,128], index: 5, kind: output, shape index: {0}]   ;;  %s1395_s6 = inlined_call_operand.hbm [shape: f32[2,1,32], index: 6, kind: output, shape index: {1}]  }
   0x1   :  { %1407 = sst [smem:[#allocation25_spill]] %s1392_s3  ;;  %s12_s23 = sshll.u32 %s1389_s0, 4  ;;  %s13_s23 = int_to_ptr.vmem [resolvable:$true] %s12_s23 }
   0x2   :  { %s811_s24 = scalar_lea.vmem %s13_s23, 16  ;;  %p816_p1 = scmp.lt.s32.totalorder %s13_s23, %s13_s23 }
   0x3   :  { %p812_p0 = scmp.ne.s32.totalorder %s13_s23, %s811_s24  ;;  %p817_p2 = scmp.lt.s32.totalorder %s811_s24, %s811_s24 }
   0x5   :  { %p818_p3 = por %p817_p2, %p816_p1 }
   0x7   :  { %p819_p4 = pnand %p818_p3, %p812_p0 }
   0x9   :  { %822 = shalt.err (!%p819_p4)  }
   0xa   :  { %s1027_s25 = smov [#allocation4]  }
   0xb   :  { %15 = dma.vmem_to_smem %s13_s23, 16, %s1027_s25, [#allocation3] }
   0xc   :  { %973 = dma.done.wait [#allocation3], 16 }
   0xd   :  { %974 = vsyncadd [#allocation3], 4294967280 }
   0xe   :  { %17 = sfence }
   0xf   :  { %18 = vsyncpa [#allocation6], 0 }
  0x10   :  { %20 = vsyncpa [#allocation6 + $0x1], 0 }
  0x11   :  { %21 = vsyncpa [#allocation9], 0 }
  0x12   :  { %22 = vsyncpa [#allocation7], 0 }
  0x13   :  { %24 = vsyncpa [#allocation7 + $0x1], 0 }
  0x14   :  { %25 = vsyncpa [#allocation12], 0 }
  0x15   :  { %27 = vsyncpa [#allocation12 + $0x1], 0  ;;  %s1078_s0 = smov 0   ;;  %s1080_s26 = smov 0  }
  0x16   :  { %s1082_s27 = smov 0   ;;  %s1084_s28 = smov 0  }
  0x17   :  { %s1086_s29 = smov 0   ;;  %s1088_s30 = smov 0  }
  0x18   :  { %s1090_s7 = smov 0   ;;  %s1092_s8 = smov 0  }
  0x19   :  { %s1094_s9 = smov 0  }
  0x1a LB: > { %1408 = sst [smem:[#allocation20_spill]] %s1001_s27  ;;  %s633_s10 = sadd.s32 4294967295, %s1025_s9   ;;  %s1025_s9 = sphi %s1094_s9, %s33_s9   ;;  %s1021_s8 = sphi %s1092_s8, %s1434_s8   ;;  %s1017_s7 = sphi %s1090_s7, %s1433_s7   ;;  %s1013_s30 = sphi %s1088_s30, %s1439_s30   ;;  %s1009_s29 = sphi %s1086_s29, %s1438_s29   ;;  %s1005_s28 = sphi %s1084_s28, %s1437_s28   ;;  %s1001_s27 = sphi %s1082_s27, %s1432_s27   ;;  %s997_s26 = sphi %s1080_s26, %s1436_s26   ;;  %s993_s0 = sphi %s1078_s0, %s1435_s0  }
  0x1b   : > { %1409 = sst [smem:[#allocation21_spill]] %s1021_s8  ;;  %s634_s11 = sadd.s32 4294967294, %s1025_s9  }
  0x1c   : > { %p79_p5 = scmp.ne.s32.totalorder %s1009_s29, %s1005_s28  ;;  %p1124_p6 = scmp.eq.s32.totalorder %s633_s10, 0 }
  0x1d   : > { %p170_p7 = scmp.ne.s32.totalorder %s1001_s27, %s997_s26  ;;  %p171_p9 = scmp.eq.s32.totalorder %s633_s10, 1 }
  0x1e   : > { %s1410_s12 = scalar_select %p1124_p6, 1, 0 }
  0x1f   : > { %p1132_p8 = por %p1124_p6, %p79_p5  ;;  %p176_p10 = scmp.ne.s32.totalorder %s997_s26, %s993_s0 }
  0x20   : > { %p177_p11 = scmp.eq.s32.totalorder %s634_s11, 1  ;;  %p1138_p12 = por %p171_p9, %p170_p7 }
  0x21   : > { %s1411_s13 = scalar_select %p1132_p8, 1, 0 }
  0x22   : > { %s1412_s14 = scalar_select %p1138_p12, 1, 0 }
  0x23   : > { %p639_p13 = scmp.ge.s32.totalorder %s1025_s9, 1  ;;  %p1143_p0 = por %p177_p11, %p176_p10 }
  0x24   : > { %p210_p1 = scmp.lt.s32.totalorder %s1025_s9, 3  ;;  %s1028_s17 = smov [#allocation8]  }
  0x25   : > { %s1413_s15 = scalar_select %p1143_p0, 1, 0 }
  0x26   : > { %p1148_p2 = pnand %p639_p13, %p210_p1  ;;  %s222_s18 = sshll.u32 %s1028_s17, 4  ;;  %s223_s18 = int_to_ptr.vmem [resolvable:$true] %s222_s18 }
  0x27   : > { %1414 = sst [smem:[#allocation22_spill]] %s1413_s15  ;;  %s45_s20 = sadd.s32 1, %s1021_s8 }
  0x28   : > { %s1415_s16 = scalar_select %p1148_p2, 1, 0 }
  0x29   : > { %p704_p3 = pneg %p1148_p2  ;;  %s1417_s3 = sld [smem:[#allocation25_spill]] }
  0x2b   : > { %p1157_p5 = pnand %p704_p3, %p1124_p6 }
  0x2d   : > { %p825_p9 = pneg %p1157_p5 }
  0x2f   : > { %s823_s23 = scalar_lea.hbm %s1417_s3, 512 }
  0x30   : > { %p824_p7 = scmp.ne.s32.totalorder %s1417_s3, %s823_s23  ;;  %p830_p13 = scmp.lt.u32.totalorder %s823_s23, %s1417_s3 }
  0x32   : > { %p826_p10 = pnand %p825_p9, %p824_p7 }
  0x34   : > { %p827_p11 = pneg %p826_p10 }
  0x36   : > { %p832_p1 = pnand %p830_p13, %p827_p11 }
  0x38   : > { %835 = shalt.err (!%p832_p1)
}
  0x39   : > { %s836_s11 = scalar_lea.vmem %s223_s18, 512  ;;  %p844_p12 = scmp.lt.s32.totalorder %s223_s18, %s223_s18 }
  0x3a   : > { %p837_p3 = scmp.ne.s32.totalorder %s223_s18, %s836_s11  ;;  %p845_p6 = scmp.lt.s32.totalorder %s836_s11, %s836_s11 }
  0x3c   : > { %p839_p4 = pnand %p837_p3, %p825_p9  ;;  %p846_p8 = por %p845_p6, %p844_p12 }
  0x3e   : > { %p840_p0 = pneg %p839_p4 }
  0x40   : > { %p847_p2 = pnand %p846_p8, %p840_p0 }
  0x42   : > { %850 = shalt.err (!%p847_p2)
}
  0x43   : > { %s1401_s17 = smov 128   ;;  %s1402_s21 = smov 8  }
  0x44   : > { %707 = dma.hbm_to_vmem [thread:$0]  (!%p1157_p5), %s1417_s3, 512, %s223_s18, [#allocation9], %s1401_s17, %s1401_s17, %s1402_s21  }
  0x45   : > { %p47_p6 = scmp.ge.s32.totalorder %s45_s20, 2  ;;  %s49_s24 = sld [smem:[#allocation4 + %s1021_s8]] }
  0x46   : > { %p73_p8 = scmp.ne.s32.totalorder %s1013_s30, %s1009_s29  ;;  %p74_p12 = scmp.eq.s32.totalorder %s1025_s9, 0 }
  0x47   : > { %s1441_s20 = smov (%p47_p6, %s45_s20), 0  ;;  %s160_s19 = sadd.s32 1, %s1001_s27 }
  0x48   : > { %1418 = sst [smem:[#allocation23_spill]] %s1441_s20  ;;  %s61_s28 = ssub.s32 %s1021_s8, %s1441_s20 }
  0x49   : > { %s55_s25 = sld [smem:[#allocation4 + %s1441_s20]]  ;;  %p158_p0 = scmp.eq.s32.totalorder %s61_s28, 0 }
  0x4a   : > { %p1191_p4 = por %p74_p12, %p73_p8  ;;  %p722_p7 = scmp.lt.s32.totalorder %s1025_s9, 2 }
  0x4b   : > { %s635_s10 = sadd.s32 4294967295, %s49_s24  ;;  %s66_s21 = sadd.s32 1, %s1013_s30 }
  0x4c   : > { %p51_p2 = scmp.gt.s32.totalorder %s635_s10, 0  ;;  %p1216_p10 = pnand %p722_p7, %p1191_p4 }
  0x4d   : > { %s1196_s11 = scalar_select %p158_p0, %s1001_s27, %s160_s19  }
  0x4e   : > { %s1443_s10 = smov (!%p51_p2, %s635_s10), 0  ;;  %p853_p1 = pneg %p1216_p10 }
  0x4f   : > { %1420 = sst [smem:[#allocation24_spill]] %s1196_s11  ;;  %s637_s22 = sadd.s32 4294967295, %s55_s25 }
  0x50   : > { %s1445_s10 = smov (%p51_p2, %s1443_s10), 0  ;;  %p57_p5 = scmp.gt.s32.totalorder %s637_s22, 0 }
  0x51   : > { %s694_s23 = scalar_select %p1191_p4, [#allocation4], [#allocation13] }
  0x52   : > { %s1447_s22 = smov (!%p57_p5, %s637_s22), 0  ;;  %s239_s11 = sand.u32 1, %s1013_s30  }
  0x53   : > { %s695_s24 = scalar_select %p1191_p4, %s1021_s8, 0 }
  0x54   : > { %s1449_s22 = smov (%p57_p5, %s1447_s22), 0  ;;  %s1451_s23 = smov (!%p722_p7, %s694_s23), [#allocation14] }
  0x55   : > { %s62_s19 = ssub.s32 %s1445_s10, %s1449_s22  ;;  %s1453_s24 = smov (!%p722_p7, %s695_s24), 0 }
  0x56   : > { %s63_s17 = sor.u32 %s62_s19, %s61_s28  ;;  %s244_s3 = sld [smem:[%s1451_s23 + %s1453_s24]] }
  0x57   : > { %p64_p9 = scmp.eq.s32.totalorder %s63_s17, 0  ;;  %s642_s27 = sshll.u32 %s239_s11, 4 }
  0x58   : > { %s646_s28 = sshll.u32 %s1021_s8, 1  ;;  %s243_s17 = scalar_lea.vmem [#allocation5], %s642_s27 }
  0x59   : > { %s1210_s25 = scalar_select %p64_p9, %s1013_s30, %s66_s21  }
  0x5a   : > { %s258_s10 = sshll.u32 %s243_s17, 4  ;;  %s1222_s10 = int_to_ptr.vmem [resolvable:$true] %s258_s10 }
  0x5c   : > { %s643_s15 = sadd.s32 4294967295, %s244_s3  ;;  %s1229_s3 = scalar_lea.sflag [#allocation6], %s239_s11 }
  0x5d   : > { %p246_p11 = scmp.gt.s32.totalorder %s643_s15, 0 }
  0x5f   : > { %s1455_s15 = smov (!%p246_p11, %s643_s15), 0 }
  0x60   : > { %s1457_s15 = smov (%p246_p11, %s1455_s15), 0 }
  0x61   : > { %s645_s21 = sshll.u32 %s1457_s15, 1 }
  0x62   : > { %s255_s22 = sadd.s32 %s646_s28, %s645_s21  ;;  %s856_s28 = scalar_lea.hbm %s1390_s1, 512 }
  0x63   : > { %s647_s18 = sshll.u32 %s255_s22, 7 }
  0x64   : > { %s1227_s19 = scalar_lea.hbm %s1390_s1, %s647_s18 }
  0x65   : > { %s851_s8 = scalar_lea.hbm %s1227_s19, 256  ;;  %p857_p8 = scmp.lt.u32.totalorder %s1227_s19, %s1390_s1 }
  0x66   : > { %p852_p13 = scmp.ne.s32.totalorder %s1227_s19, %s851_s8  ;;  %p858_p12 = scmp.lt.u32.totalorder %s856_s28, %s851_s8 }
  0x67   : > { %p860_p2 = scmp.lt.u32.totalorder %s851_s8, %s1227_s19 }
  0x68   : > { %p854_p3 = pnand %p853_p1, %p852_p13  ;;  %p859_p0 = por %p858_p12, %p857_p8 }
  0x6a   : > { %p855_p6 = pneg %p854_p3  ;;  %p861_p4 = por %p860_p2, %p859_p0 }
  0x6c   : > { %p862_p5 = pnand %p861_p4, %p855_p6 }
  0x6e   : > { %865 = shalt.err (!%p862_p5)
}
  0x6f   : > { %s866_s11 = scalar_lea.vmem %s1222_s10, 256  ;;  %s1031_s22 = smov [#allocation5]  }
  0x70   : > { %p867_p7 = scmp.ne.s32.totalorder %s1222_s10, %s866_s11  ;;  %s871_s18 = sshll.u32 %s1031_s22, 4  ;;  %s872_s18 = int_to_ptr.vmem [resolvable:$false] %s871_s18 }
  0x71   : > { %s873_s23 = scalar_lea.vmem %s872_s18, 512  ;;  %p874_p13 = scmp.lt.s32.totalorder %s1222_s10, %s872_s18 }
  0x72   : > { %p869_p9 = pnand %p867_p7, %p853_p1  ;;  %p875_p3 = scmp.lt.s32.totalorder %s873_s23, %s866_s11 }
  0x74   : > { %p870_p11 = pneg %p869_p9  ;;  %p876_p8 = por %p875_p3, %p874_p13 }
  0x76   : > { %p877_p12 = pnand %p876_p8, %p870_p11 }
  0x78   : > { %880 = shalt.err (!%p877_p12)
}
  0x79   : > { %s1422_s8 = smov 8   ;;  %s1423_s24 = smov 128  }
  0x7a   : > { %713 = dma.hbm_to_vmem [thread:$0]  (!%p1216_p10), %s1227_s19, 256, %s1222_s10, %s1229_s3, %s1423_s24, %s1423_s24, %s1422_s8  }
  0x7b   : > { %p1424_p1 = scmp.ne.s32.totalorder %s1415_s16, 0 }
  0x7c   : > { %s278_s27 = sand.u32 (!%p1424_p1), 1, %s1009_s29   ;;  %p1425_p6 = scmp.ne.s32.totalorder (!%p1424_p1), %s1411_s13, 0 }
  0x7d   : > { %276 = sbr.rel (%p1424_p1) target bundleno = 672 (0x2a0), region = 36  ;;  %s649_s15 = sshll.u32 (!%p1424_p1), %s278_s27, 4 }
  0x7e   : > { %s279_s28 = scalar_lea.sflag (!%p1424_p1), [#allocation6], %s278_s27  ;;  %s282_s17 = scalar_lea.vmem (!%p1424_p1), [#allocation5], %s649_s15 }
  0x84   : > { %976 = dma.done.wait (%p1425_p6), %s279_s28, 256  }
  0x85   : > { %978 = vsyncadd (%p1425_p6), %s279_s28, 4294967040  ;;  %p1426_p0 = scmp.ne.s32.totalorder %s1410_s12, 0 }
  0x87   : > { %980 = dma.done.wait (%p1426_p0), [#allocation9], 512  }
  0x88   : > { %982 = vsyncadd (%p1426_p0), [#allocation9], 4294966784  ;;  %s1272_s16 = sand.u32 1, %s997_s26   ;;  %p326_p10 = scmp.lt.s32.totalorder %s1017_s7, 1  ;;  %vm333_vm0 = vcmask 253952   ;;  %v1032_v0 = vmov 0.0  }
  0x89   : > { %s335_s20 = sld [smem:[#allocation4 + %s1017_s7]]  ;;  %334 = vst.msk [vmem:[#allocation2] sm:$0x1] %vm333_vm0, %v1032_v0  ;;  %s312_s3 = scalar_lea.vmem [#allocation10], %s1272_s16 }
  0x8a   : > { %s327_s13 = scalar_select %p326_p10, %s1017_s7, 1 }
  0x8b   : > { %s318_s21 = scalar_lea.vmem [#allocation11], %s1272_s16 }
  0x8c   : > { %s1281_s12 = scalar_lea.vmem %s1391_s2, %s327_s13 }
  0x8f   : > { %p652_p2 = scmp.le.s32.totalorder %s335_s20, 0 }
  0x90   : > { %v653_v1 = vld [vmem:[%s1281_s12] ss:$0 sm:$0xff] (!%p652_p2)  ;;  %v1033_v2 = vmov (!%p652_p2), 0   ;;  %v342_v3 = vlaneseq (!%p652_p2)  ;;  %v340_v7 = vld [vmem:[%s282_s17] sm:$0xff] (!%p652_p2)  ;;  %vm366_vm3 = vcmask (!%p652_p2), 261120   ;;  %v1034_v9 = vmov (!%p652_p2), 0.0  }
  0x91   : > { %339 = sbr.rel (%p652_p2) target bundleno = 296 (0x128), region = 52  ;;  %807 = vset.pattern.permute.xlu0 (!%p652_p2), %v1033_v2  ;;  %v341_v8 = vld [vmem:[%s282_s17 + $0x8] sm:$0xff] (!%p652_p2) }
  0x92   : > { %355 = vperm.xlu0 (!%p652_p2), %807, %v653_v1   ;;  %v343_v4 = vshrl.u32 (!%p652_p2), %v342_v3, 7  ;;  %v359_v22 = vld [vmem:[#allocation2] sm:$0x1] (!%p652_p2) }
  0x94   : > { %v344_v5 = vadd.s32 (!%p652_p2), 8, %v343_v4 }
 0x111   : > { %v356_v6 = vpop.permute.xlu0 %355 }
 0x112   : > { %vm357_vm1 = vcmp.lt.s32.totalorder %v343_v4, %v356_v6  ;;  %vm358_vm2 = vcmp.lt.s32.totalorder %v344_v5, %v356_v6 }
 0x113   : > { %v654_v10 = vsel %vm357_vm1, 1.0, %v1034_v9  ;;  %v655_v11 = vsel %vm358_vm2, 1.0, %v1034_v9 }
 0x114   : > { %v364_v12 = vmul.f32 %v654_v10, %v340_v7  ;;  %v365_v13 = vmul.f32 %v655_v11, %v341_v8 }
 0x116   : > { %v367_v14 = vsel %vm366_vm3, %v364_v12, 0.0  ;;  %v368_v15 = vsel %vm366_vm3, %v365_v13, 0.0 }
 0x117   : > { %v369_v16 = vadd.f32 %v368_v15, %v367_v14 }
 0x119   : > { %v370_v17 = vrot.slane %v369_v16, 4 }
 0x11b   : > { %v371_v18 = vadd.f32 %v370_v17, %v369_v16 }
 0x11d   : > { %v372_v19 = vrot.slane %v371_v18, 2 }
 0x11f   : > { %v373_v20 = vadd.f32 %v372_v19, %v371_v18 }
 0x121   : > { %v374_v21 = vrot.slane %v373_v20, 1 }
 0x123   : > { %v375_v23 = vadd.f32 %v374_v21, %v373_v20 }
 0x125   : > { %v376_v24 = vadd.f32 %v375_v23, %v359_v22 }
 0x127   : > { %378 = vst.msk [vmem:[#allocation2] sm:$0x1] %vm333_vm0, %v376_v24 }
 0x128 PF: > { %v382_v25 = vld [vmem:[%s1281_s12] sm:$0x1]  ;;  %v1035_v26 = vmov 0   ;;  %v399_v29 = vld [vmem:[#allocation8] sm:$0xff]  ;;  %v400_v30 = vld [vmem:[#allocation8 + $0x8] sm:$0xff]  ;;  %v1036_v32 = vmov 0.0|0.0   ;;  %v391_v36 = vlaneseq }
 0x129   : > { %808 = vset.pattern.permute.xlu0 %v1035_v26  ;;  %v383_v27 = vcvt.s32.f32 %v382_v25  ;;  %v401_v31 = vld [vmem:[#allocation8 + $0x10] sm:$0xff]  ;;  %686 = vmatprep.subr.bf16.mxu0 %v1036_v32  ;;  %v687_v33 = vpack.c.bf16 %v400_v30, %v399_v29  ;;  %v402_v34 = vld [vmem:[#allocation8 + $0x18] sm:$0xff]  ;;  %vm1037_vm4 = vmmov 0   ;;  %vm404_vm5 = vcmask 261120   ;;  %s657_s11 = sshll.u32 %s1017_s7, 4  ;;  %s509_s8 = sshll.u32 %s318_s21, 4  ;;  %s510_s8 = int_to_ptr.vmem [resolvable:$true] %s509_s8 }
 0x12a   : > { %683 = vmatprep.mubr.msk.f32.mxu0 %vm1037_vm4, %v1032_v0  ;;  %v690_v35 = vpack.c.bf16 %v402_v34, %v401_v31  ;;  %v392_v37 = vshrl.u32 %v391_v36, 7  ;;  %s1297_s23 = scalar_lea.hbm %s1395_s6, %s657_s11  ;;  %s484_s24 = scalar_lea.sflag [#allocation12], %s1272_s16 }
 0x12b   : > { %v384_v28 = vmax.f32 %v383_v27, 1e-09  ;;  %688 = vmatpush3.bf16.msra.mxu0 %v687_v33  ;;  %s881_s27 = scalar_lea.vmem %s510_s8, 16  ;;  %p1427_p5 = scmp.ne.s32.totalorder %s1412_s14, 0 }
 0x12c   : > { %689 = vmatprep.subr.bf16.mxu0 %v1036_v32  ;;  %v393_v38 = vsub.s32 0, %v392_v37  ;;  %p882_p4 = scmp.ne.s32.totalorder %s510_s8, %s881_s27  ;;  %s1038_s15 = smov [#allocation11]  }
 0x12d   : > { %388 = vperm.xlu0 %808, %v384_v28   ;;  %s885_s28 = sshll.u32 %s1038_s15, 4  ;;  %s886_s28 = int_to_ptr.vmem [resolvable:$false] %s885_s28 }
 0x12e   : > { %v385_v41 = vld [vmem:[#allocation2] sm:$0x1]  ;;  %p883_p7 = pnand %p882_p4, %p1427_p5  ;;  %s887_s17 = scalar_lea.vmem %s886_s28, 32 }
 0x12f   : > { %691 = vmatpush3.bf16.msra.mxu0 %v690_v35  ;;  %p888_p11 = scmp.lt.s32.totalorder %s510_s8, %s886_s28  ;;  %p889_p13 = scmp.lt.s32.totalorder %s887_s17, %s881_s27 }
 0x130   : > { %p884_p9 = pneg %p883_p7 }
 0x131   : > { %p890_p3 = por %p889_p13, %p888_p11 }
 0x133   : > { %p891_p8 = pnand %p890_p3, %p884_p9 }
 0x1ac   : > { %v389_v39 = vpop.permute.xlu0 %388 }
 0x1ad   : > { %v394_v40 = vrot.slane %v389_v39, %v393_v38 }
 0x1af   : > { %809 = vrcp.f32 %v394_v40 }
 0x1b9   : > { %v810_v42 = vpop.eup %809 }
 0x1ba   : > { %v396_v43 = vmul.f32 %v810_v42, %v385_v41 }
 0x1bc   : > { %684 = vmatmul.mubr.msk.f32.vlgmr.msra.gmra.mrb[0].mxu0 %vm404_vm5, %v396_v43  ;;  %398 = vst.msk [vmem:[%s318_s21] sm:$0x1] %vm333_vm0, %v396_v43 }
 0x1bd   : > { %894 = shalt.err (!%p891_p8)
}
 0x1be   : > { %s895_s20 = scalar_lea.hbm %s1297_s23, 16  ;;  %s899_s19 = scalar_lea.hbm %s1395_s6, 32 }
 0x1bf   : > { %p896_p12 = scmp.ne.s32.totalorder %s1297_s23, %s895_s20  ;;  %p900_p0 = scmp.lt.u32.totalorder %s1297_s23, %s1395_s6 }
 0x1c0   : > { %p901_p10 = scmp.lt.u32.totalorder %s899_s19, %s895_s20  ;;  %p903_p4 = scmp.lt.u32.totalorder %s895_s20, %s1297_s23 }
 0x1c1   : > { %p897_p1 = pnand %p896_p12, %p1427_p5 }
 0x1c2   : > { %p902_p2 = por %p901_p10, %p900_p0 }
 0x1c3   : > { %p898_p6 = pneg %p897_p1 }
 0x1c4   : > { %p904_p7 = por %p903_p4, %p902_p2 }
 0x1c6   : > { %p905_p9 = pnand %p904_p7, %p898_p6 }
 0x1c8   : > { %908 = shalt.err (!%p905_p9)
}
 0x1c9   : > { %701 = dma.vmem_to_hbm [thread:$0]  (%p1427_p5), %s510_s8, 16, %s1297_s23, %s484_s24   ;;  %v403_v44 = vld [vmem:[%s1393_s4] sm:$0x1] }
 0x1ca   : > { %s496_s27 = sshll.u32 %s312_s3, 4  ;;  %s1329_s17 = scalar_lea.hbm %s1394_s5, %s657_s11  ;;  %s1331_s27 = int_to_ptr.vmem [resolvable:$true] %s496_s27 }
 0x1cb   : > { %s480_s23 = scalar_lea.sflag [#allocation7], %s1272_s16  ;;  %s909_s8 = scalar_lea.vmem %s1331_s27, 16 }
 0x1cc   : > { %p910_p11 = scmp.ne.s32.totalorder %s1331_s27, %s909_s8  ;;  %s1039_s24 = smov [#allocation10]  }
 0x1cd   : > { %s913_s7 = sshll.u32 %s1039_s24, 4  ;;  %s914_s7 = int_to_ptr.vmem [resolvable:$false] %s913_s7 }
 0x1ce   : > { %p911_p13 = pnand %p910_p11, %p1427_p5  ;;  %s915_s20 = scalar_lea.vmem %s914_s7, 32 }
 0x1cf   : > { %p916_p8 = scmp.lt.s32.totalorder %s1331_s27, %s914_s7  ;;  %p917_p12 = scmp.lt.s32.totalorder %s915_s20, %s909_s8 }
 0x1d0   : > { %p912_p3 = pneg %p911_p13 }
 0x1d1   : > { %p918_p1 = por %p917_p12, %p916_p8 }
 0x1d3   : > { %p919_p6 = pnand %p918_p1, %p912_p3 }
 0x28f   : > { %v474_v45 = vpop.f32.mrb[0].mxu0 }
 0x290   : > { %v475_v46 = vadd.f32 %v474_v45, %v403_v44  ;;  %v685_v47 = vpop.f32.mrb[1].mxu0 }
 0x292   : > { %478 = vst [vmem:[%s312_s3] sm:$0x1] %v475_v46 }
 0x293   : > { %922 = shalt.err (!%p919_p6)
}
 0x294   : > { %s923_s16 = scalar_lea.hbm %s1329_s17, 16  ;;  %s927_s13 = scalar_lea.hbm %s1394_s5, 32 }
 0x295   : > { %p924_p0 = scmp.ne.s32.totalorder %s1329_s17, %s923_s16  ;;  %p928_p4 = scmp.lt.u32.totalorder %s1329_s17, %s1394_s5 }
 0x296   : > { %p929_p7 = scmp.lt.u32.totalorder %s927_s13, %s923_s16  ;;  %p931_p11 = scmp.lt.u32.totalorder %s923_s16, %s1329_s17 }
 0x297   : > { %p925_p10 = pnand %p924_p0, %p1427_p5 }
 0x298   : > { %p930_p9 = por %p929_p7, %p928_p4 }
 0x299   : > { %p926_p2 = pneg %p925_p10 }
 0x29a   : > { %p932_p13 = por %p931_p11, %p930_p9 }
 0x29c   : > { %p933_p3 = pnand %p932_p13, %p926_p2 }
 0x29e   : > { %936 = shalt.err (!%p933_p3)
}
 0x29f   : > { %700 = dma.vmem_to_hbm [thread:$0]  (%p1427_p5), %s1331_s27, 16, %s1329_s17, %s480_s23  }
 0x2a0 PF: > { %s1428_s12 = sld [smem:[#allocation22_spill]]  ;;  %s521_s21 = sand.u32 1, %s993_s0  }
 0x2a1   : > { %p1430_p12 = scmp.ge.s32.totalorder %s1025_s9, 2  ;;  %s522_s22 = scalar_lea.sflag [#allocation7], %s521_s21 }
 0x2a6   : > { %p1429_p8 = scmp.ne.s32.totalorder %s1428_s12, 0 }
 0x2a8   : > { %p715_p1 = pnand %p1430_p12, %p1429_p8 }
 0x2aa   : > { %984 = dma.done.wait (!%p715_p1), %s522_s22, 16  }
 0x2ab   : > { %986 = vsyncadd (!%p715_p1), %s522_s22, 4294967280  ;;  %s530_s18 = scalar_lea.sflag [#allocation12], %s521_s21 }
 0x2ac   : > { %988 = dma.done.wait (!%p715_p1), %s530_s18, 16  }
 0x2ad   : > { %990 = vsyncadd (!%p715_p1), %s530_s18, 4294967280  ;;  %s33_s9 = sadd.s32 1, %s1025_s9   ;;  %s1431_s14 = sld [smem:[#allocation20_spill]] }
 0x2ae   : > { %p30_p6 = scmp.ge.s32.totalorder %s33_s9, 4   ;;  %s1432_s27 = sld [smem:[#allocation24_spill]] }
 0x2af   : > { %s1433_s7 = sld [smem:[#allocation21_spill]]  ;;  %s1434_s8 = sld [smem:[#allocation23_spill]] }
 0x2b0   : > { %s1435_s0 = smov %s997_s26  ;;  %s1437_s28 = smov %s1009_s29 }
 0x2b1   : > { %s1438_s29 = smov %s1013_s30  ;;  %s1439_s30 = smov %s1210_s25 }
 0x2b2   :  { %32 = sbr.rel (!%p30_p6) target bundleno = 26 (0x1a), region = 117 }
 0x2b3   : > { %s1436_s26 = smov %s1431_s14 }
 0x2b9   :  { %534 = vsyncpa [#allocation6], 1 }
 0x2ba   :  { %536 = vsyncpa [#allocation6 + $0x1], 1 }
 0x2bb   :  { %537 = vsyncpa [#allocation9], 1 }
 0x2bc   :  { %538 = vsyncpa [#allocation7], 1 }
 0x2bd   :  { %540 = vsyncpa [#allocation7 + $0x1], 1 }
 0x2be   :  { %541 = vsyncpa [#allocation12], 1 }
 0x2bf   :  { %543 = vsyncpa [#allocation12 + $0x1], 1 }

</bundles_post_ra>
